<compile_context>
chip_gen: v7x
topology: tpu7x:2x2x1
jax: 0.10.0
libtpu: 0.0.40
codegen_flags: <defaults>
</compile_context>

<pallas_src>
import functools

import jax
import jax.numpy as jnp
from jax.experimental import pallas as pl
from jax.experimental.pallas import tpu as pltpu

_LANE = 128  # pad feature dims to multiples of the 128-lane vreg width


def _round_up(n, m):
    return ((n + m - 1) // m) * m


def _cdiv(a, b):
    return -(-a // b)


def _sublane_pack(dtype):
    # Rows per packed sublane: 8 for f32, 16 for bf16/fp16, 32 for 8-bit.
    return 8 * (4 // jnp.dtype(dtype).itemsize)


# ---------------------------------------------------------------------------
# Fused kernel: head Linear -> L x (h + relu(Linear(h))) -> tail Linear
# ---------------------------------------------------------------------------
def _fused_resmlp_kernel(x_ref, wh_ref, bh_ref, wl_ref, bl_ref, wt_ref, bt_ref,
                         o_ref, *, num_res_layers):
    f32 = jnp.float32

    # Head: h = x @ Wh + bh   (single MXU pass, f32 accumulation)
    h = jnp.dot(x_ref[...], wh_ref[...], preferred_element_type=f32)
    h = h + bh_ref[...].astype(f32)

    # Residual blocks (constant hidden width): h = h + relu(h @ Wl + bl).
    # Statically unrolled; stacked weights stay resident in VMEM.
    for l in range(num_res_layers):
        y = jnp.dot(h.astype(wl_ref.dtype), wl_ref[l], preferred_element_type=f32)
        y = y + bl_ref[l].astype(f32)
        h = h + jnp.maximum(y, 0.0)

    # Tail: o = h @ Wt + bt
    out = jnp.dot(h.astype(wt_ref.dtype), wt_ref[...], preferred_element_type=f32)
    o_ref[...] = (out + bt_ref[...].astype(f32)).astype(o_ref.dtype)


# ---------------------------------------------------------------------------
# Parameter prep: pad to 128 lanes, stack residual layers (done once)
# ---------------------------------------------------------------------------
def prepare_params(params):
    wh, bh = params["head"]
    wt, bt = params["tail"]
    layers = params["layers"]

    in_dim, hid = wh.shape
    out_dim = wt.shape[1]
    if wt.shape[0] != hid:
        raise ValueError("tail input width must match hidden width")
    for w, _ in layers:
        if w.shape != (hid, hid):
            raise ValueError(
                "residual blocks x + relu(Linear(x)) require a constant hidden "
                f"width; got weight {w.shape}, expected {(hid, hid)}")

    din_p = _round_up(in_dim, _LANE)
    dhid_p = _round_up(hid, _LANE)
    dout_p = _round_up(out_dim, _LANE)
    dt = wh.dtype

    def pad_w(w, rows, cols):
        return jnp.pad(w, ((0, rows - w.shape[0]), (0, cols - w.shape[1])))

    def pad_b(b, cols):
        return jnp.pad(b, (0, cols - b.shape[0])).reshape(1, cols)

    n_res = len(layers)
    if n_res > 0:
        wl = jnp.stack([pad_w(w, dhid_p, dhid_p) for w, _ in layers])
        bl = jnp.stack([pad_b(b, dhid_p) for _, b in layers])
    else:  # dummy, never read (num_res_layers == 0 skips the loop)
        wl = jnp.zeros((1, dhid_p, dhid_p), dt)
        bl = jnp.zeros((1, 1, dhid_p), dt)

    return dict(
        wh=pad_w(wh, din_p, dhid_p), bh=pad_b(bh, dhid_p),
        wl=wl, bl=bl,
        wt=pad_w(wt, dhid_p, dout_p), bt=pad_b(bt, dout_p),
        num_res=n_res, in_dim=in_dim, out_dim=out_dim,
    )


# ---------------------------------------------------------------------------
# Fused forward
# ---------------------------------------------------------------------------
def res_mlp_forward(x, prepared, *, batch_tile=512):
    batch, in_dim = x.shape
    if in_dim != prepared["in_dim"]:
        raise ValueError("input feature dim mismatch")

    wh, bh = prepared["wh"], prepared["bh"]
    wl, bl = prepared["wl"], prepared["bl"]
    wt, bt = prepared["wt"], prepared["bt"]
    din_p, dhid_p = wh.shape
    dout_p = wt.shape[1]
    n_stack = wl.shape[0]
    num_res = prepared["num_res"]
    out_dim = prepared["out_dim"]

    # --- Batch tiling --------------------------------------------------------
    # Sublane-pack-aligned tiles keep x / out DMAs and stores unmasked
    # (8 rows for f32, 16 for bf16). Ceil-split the batch to minimize padding.
    pack = _sublane_pack(x.dtype)
    batch_tile = max(pack, _round_up(batch_tile, pack))
    n_tiles = _cdiv(batch, batch_tile)
    # Split big batches into >=2 tiles so the "parallel" batch axis is actually
    # sharded across both v7x TensorCores (free on single-TC v5e/v6e).
    if n_tiles == 1 and batch >= 2 * _LANE:
        n_tiles = 2
    tile = _round_up(_cdiv(batch, n_tiles), pack)
    batch_p = tile * n_tiles

    if batch_p != batch or din_p != in_dim:
        x_p = jnp.pad(x, ((0, batch_p - batch), (0, din_p - in_dim)))
    else:
        x_p = x

    kernel = functools.partial(_fused_resmlp_kernel, num_res_layers=num_res)

    # --- VMEM budget: single-buffered weights + double-buffered act tiles -----
    w_itemsize = jnp.dtype(wh.dtype).itemsize
    x_itemsize = jnp.dtype(x.dtype).itemsize
    weight_bytes = (wh.size + bh.size + wl.size + bl.size + wt.size + bt.size) * w_itemsize
    act_bytes = 2 * tile * (din_p + dout_p) * x_itemsize        # in/out, 2 buffers
    work_bytes = 4 * tile * dhid_p * 4                          # f32 h + temporaries
    vmem_limit = int(min(max(1.25 * (weight_bytes + act_bytes + work_bytes) + (2 << 20),
                             32 << 20), 128 << 20))
    # TODO(synk): if the stacked residual weights alone exceed ~32 MiB, stream
    # (1, D, D) layer blocks (pltpu.emit_pipeline over the layer axis with an
    # f32 VMEM accumulator for h) instead of keeping the whole stack resident;
    # needed to fit very deep/wide ResMLPs into v7x's 64 MiB VMEM.

    flops = 2 * batch_p * (din_p * dhid_p + num_res * dhid_p * dhid_p + dhid_p * dout_p)
    bytes_accessed = (x_p.size * x_itemsize + weight_bytes
                      + batch_p * dout_p * x_itemsize)

    const1 = pl.Buffered(1)  # constant-index inputs: never re-fetched

    y_p = pl.pallas_call(
        kernel,
        out_shape=jax.ShapeDtypeStruct((batch_p, dout_p), x.dtype),
        grid=(n_tiles,),
        in_specs=[
            pl.BlockSpec((tile, din_p), lambda i: (i, 0)),                     # x streams
            pl.BlockSpec((din_p, dhid_p), lambda i: (0, 0),
                         pipeline_mode=const1),                               # head W
            pl.BlockSpec((1, dhid_p), lambda i: (0, 0),
                         pipeline_mode=const1),                               # head b
            pl.BlockSpec((n_stack, dhid_p, dhid_p), lambda i: (0, 0, 0),
                         pipeline_mode=const1),                               # stacked res W
            pl.BlockSpec((n_stack, 1, dhid_p), lambda i: (0, 0, 0),
                         pipeline_mode=const1),                               # stacked res b
            pl.BlockSpec((dhid_p, dout_p), lambda i: (0, 0),
                         pipeline_mode=const1),                               # tail W
            pl.BlockSpec((1, dout_p), lambda i: (0, 0),
                         pipeline_mode=const1),                               # tail b
        ],
        out_specs=pl.BlockSpec((tile, dout_p), lambda i: (i, 0)),
        compiler_params=pltpu.CompilerParams(
            dimension_semantics=("parallel",),
            vmem_limit_bytes=vmem_limit,
        ),
        cost_estimate=pl.CostEstimate(flops=flops, transcendentals=0,
                                      bytes_accessed=bytes_accessed),
    )(x_p, wh, bh, wl, bl, wt, bt)

    if batch_p != batch or dout_p != out_dim:
        return y_p[:batch, :out_dim]
    return y_p


# ---------------------------------------------------------------------------
# Deterministic parameter init (PyTorch Linear-style uniform(-1/sqrt(fan_in)))
# ---------------------------------------------------------------------------
def init_params(key, in_dim, out_dim, hidden, dtype=jnp.float32):
    def linear_init(k, fan_in, fan_out):
        kw, kb = jax.random.split(k)
        bound = 1.0 / jnp.sqrt(fan_in)
        w = jax.random.uniform(kw, (fan_in, fan_out), dtype, -bound, bound)
        b = jax.random.uniform(kb, (fan_out,), dtype, -bound, bound)
        return w, b

    keys = jax.random.split(key, len(hidden) + 1)
    params = {"head": linear_init(keys[0], in_dim, hidden[0]), "layers": []}
    for i in range(len(hidden) - 1):
        params["layers"].append(linear_init(keys[1 + i], hidden[i], hidden[i + 1]))
    params["tail"] = linear_init(keys[-1], hidden[-1], out_dim)
    return params


# Pure-JAX f32 reference (HIGHEST precision). The kernel uses the fast bf16
# MXU path with f32 accumulation, so comparison tolerance is bf16-level.
def res_mlp_ref(x, params):
    hi = jax.lax.Precision.HIGHEST
    w, b = params["head"]
    x = jnp.dot(x, w, precision=hi) + b
    for w, b in params["layers"]:
        x = x + jnp.maximum(jnp.dot(x, w, precision=hi) + b, 0.0)
    w, b = params["tail"]
    return jnp.dot(x, w, precision=hi) + b


# ---------------------------------------------------------------------------
if __name__ == "__main__":
    key = jax.random.PRNGKey(0)
    k_x, k_p, k_x2 = jax.random.split(key, 3)

    batch, in_dim, out_dim = 8, 16, 8
    hidden = (32, 32, 32)  # residual blocks require constant hidden width

    x = jax.random.normal(k_x, (batch, in_dim), dtype=jnp.float32)
    params = init_params(k_p, in_dim, out_dim, hidden)
    prepared = prepare_params(params)

    fwd = jax.jit(functools.partial(res_mlp_forward, prepared=prepared))
    out = fwd(x)
    jax.block_until_ready(out)
    assert out.shape == (batch, out_dim), out.shape

    ref = res_mlp_ref(x, params)
    err = float(jnp.max(jnp.abs(out - ref)))
    assert jnp.allclose(out, ref, atol=5e-2, rtol=5e-2), f"max_abs_err={err}"

    # Multi-tile / ragged batch path: >=2 grid steps, minimal-padding tiling.
    batch2 = 300
    x2 = jax.random.normal(k_x2, (batch2, in_dim), dtype=jnp.float32)
    fwd2 = jax.jit(functools.partial(res_mlp_forward, prepared=prepared,
                                     batch_tile=256))
    out2 = fwd2(x2)
    jax.block_until_ready(out2)
    assert out2.shape == (batch2, out_dim), out2.shape
    ref2 = res_mlp_ref(x2, params)
    err2 = float(jnp.max(jnp.abs(out2 - ref2)))
    assert jnp.allclose(out2, ref2, atol=5e-2, rtol=5e-2), f"max_abs_err={err2}"

    print("KERNEL_OK")
</pallas_src>

<mosaic_0001>
module attributes {stable_mosaic.version = 11 : i64} {
  func.func @_fused_resmlp_kernel(%arg0: i32, %arg1: memref<8x128xf32, #tpu.memory_space<vmem>>, %arg2: memref<128x128xf32, #tpu.memory_space<vmem>>, %arg3: memref<1x128xf32, #tpu.memory_space<vmem>>, %arg4: memref<2x128x128xf32, #tpu.memory_space<vmem>>, %arg5: memref<2x1x128xf32, #tpu.memory_space<vmem>>, %arg6: memref<128x128xf32, #tpu.memory_space<vmem>>, %arg7: memref<1x128xf32, #tpu.memory_space<vmem>>, %arg8: memref<8x128xf32, #tpu.memory_space<vmem>>) attributes {dimension_semantics = [#tpu.dimension_semantics<parallel>], iteration_bounds = array<i64: 1>, scalar_prefetch = 0 : i64, scratch_operands = 0 : i64, tpu.core_type = #tpu.core_type<tc>, window_params = [{transform_indices = @transform_0, window_bounds = array<i64: 8, 128>}, {pipeline_mode = #tpu.pipeline_mode<synchronous>, transform_indices = @transform_1, window_bounds = array<i64: 128, 128>}, {pipeline_mode = #tpu.pipeline_mode<synchronous>, transform_indices = @transform_2, window_bounds = array<i64: 1, 128>}, {pipeline_mode = #tpu.pipeline_mode<synchronous>, transform_indices = @transform_3, window_bounds = array<i64: 2, 128, 128>}, {pipeline_mode = #tpu.pipeline_mode<synchronous>, transform_indices = @transform_4, window_bounds = array<i64: 2, 1, 128>}, {pipeline_mode = #tpu.pipeline_mode<synchronous>, transform_indices = @transform_5, window_bounds = array<i64: 128, 128>}, {pipeline_mode = #tpu.pipeline_mode<synchronous>, transform_indices = @transform_6, window_bounds = array<i64: 1, 128>}, {transform_indices = @transform_7, window_bounds = array<i64: 8, 128>}]} {
    %c0 = arith.constant 0 : index
    %c0_0 = arith.constant 0 : index
    %0 = vector.load %arg1[%c0, %c0_0] : memref<8x128xf32, #tpu.memory_space<vmem>>, vector<8x128xf32>
    %c0_1 = arith.constant 0 : index
    %c0_2 = arith.constant 0 : index
    %1 = vector.load %arg2[%c0_1, %c0_2] : memref<128x128xf32, #tpu.memory_space<vmem>>, vector<128x128xf32>
    %cst = arith.constant dense<0.000000e+00> : vector<8x128xf32>
    %2 = tpu.matmul %0, %1, %cst {dimension_numbers = #tpu.dot_dimension_numbers<[1], [0], [0], [1], [0, 0, 1, 1], [], []>} : vector<8x128xf32>, vector<128x128xf32>, vector<8x128xf32> -> vector<8x128xf32>
    %c0_3 = arith.constant 0 : index
    %c0_4 = arith.constant 0 : index
    %3 = vector.load %arg3[%c0_3, %c0_4] : memref<1x128xf32, #tpu.memory_space<vmem>>, vector<1x128xf32>
    %4 = vector.broadcast %3 : vector<1x128xf32> to vector<8x128xf32>
    %5 = arith.addf %2, %4 : vector<8x128xf32>
    %c0_5 = arith.constant 0 : index
    %c0_6 = arith.constant 0 : index
    %c0_7 = arith.constant 0 : index
    %6 = vector.load %arg4[%c0_5, %c0_6, %c0_7] : memref<2x128x128xf32, #tpu.memory_space<vmem>>, vector<1x128x128xf32>
    %7 = vector.shape_cast %6 : vector<1x128x128xf32> to vector<128x128xf32>
    %cst_8 = arith.constant dense<0.000000e+00> : vector<8x128xf32>
    %8 = tpu.matmul %5, %7, %cst_8 {dimension_numbers = #tpu.dot_dimension_numbers<[1], [0], [0], [1], [0, 0, 1, 1], [], []>} : vector<8x128xf32>, vector<128x128xf32>, vector<8x128xf32> -> vector<8x128xf32>
    %c0_9 = arith.constant 0 : index
    %c0_10 = arith.constant 0 : index
    %c0_11 = arith.constant 0 : index
    %9 = vector.load %arg5[%c0_9, %c0_10, %c0_11] : memref<2x1x128xf32, #tpu.memory_space<vmem>>, vector<1x1x128xf32>
    %10 = vector.shape_cast %9 : vector<1x1x128xf32> to vector<1x128xf32>
    %11 = vector.broadcast %10 : vector<1x128xf32> to vector<8x128xf32>
    %12 = arith.addf %8, %11 : vector<8x128xf32>
    %cst_12 = arith.constant 0.000000e+00 : f32
    %13 = vector.broadcast %cst_12 : f32 to vector<8x128xf32>
    %14 = arith.maximumf %12, %13 : vector<8x128xf32>
    %15 = arith.addf %5, %14 : vector<8x128xf32>
    %c1 = arith.constant 1 : index
    %c0_13 = arith.constant 0 : index
    %c0_14 = arith.constant 0 : index
    %16 = vector.load %arg4[%c1, %c0_13, %c0_14] : memref<2x128x128xf32, #tpu.memory_space<vmem>>, vector<1x128x128xf32>
    %17 = vector.shape_cast %16 : vector<1x128x128xf32> to vector<128x128xf32>
    %cst_15 = arith.constant dense<0.000000e+00> : vector<8x128xf32>
    %18 = tpu.matmul %15, %17, %cst_15 {dimension_numbers = #tpu.dot_dimension_numbers<[1], [0], [0], [1], [0, 0, 1, 1], [], []>} : vector<8x128xf32>, vector<128x128xf32>, vector<8x128xf32> -> vector<8x128xf32>
    %c1_16 = arith.constant 1 : index
    %c0_17 = arith.constant 0 : index
    %c0_18 = arith.constant 0 : index
    %19 = vector.load %arg5[%c1_16, %c0_17, %c0_18] : memref<2x1x128xf32, #tpu.memory_space<vmem>>, vector<1x1x128xf32>
    %20 = vector.shape_cast %19 : vector<1x1x128xf32> to vector<1x128xf32>
    %21 = vector.broadcast %20 : vector<1x128xf32> to vector<8x128xf32>
    %22 = arith.addf %18, %21 : vector<8x128xf32>
    %cst_19 = arith.constant 0.000000e+00 : f32
    %23 = vector.broadcast %cst_19 : f32 to vector<8x128xf32>
    %24 = arith.maximumf %22, %23 : vector<8x128xf32>
    %25 = arith.addf %15, %24 : vector<8x128xf32>
    %c0_20 = arith.constant 0 : index
    %c0_21 = arith.constant 0 : index
    %26 = vector.load %arg6[%c0_20, %c0_21] : memref<128x128xf32, #tpu.memory_space<vmem>>, vector<128x128xf32>
    %cst_22 = arith.constant dense<0.000000e+00> : vector<8x128xf32>
    %27 = tpu.matmul %25, %26, %cst_22 {dimension_numbers = #tpu.dot_dimension_numbers<[1], [0], [0], [1], [0, 0, 1, 1], [], []>} : vector<8x128xf32>, vector<128x128xf32>, vector<8x128xf32> -> vector<8x128xf32>
    %c0_23 = arith.constant 0 : index
    %c0_24 = arith.constant 0 : index
    %28 = vector.load %arg7[%c0_23, %c0_24] : memref<1x128xf32, #tpu.memory_space<vmem>>, vector<1x128xf32>
    %29 = vector.broadcast %28 : vector<1x128xf32> to vector<8x128xf32>
    %30 = arith.addf %27, %29 : vector<8x128xf32>
    %c0_25 = arith.constant 0 : index
    %c0_26 = arith.constant 0 : index
    %31 = vector.load %arg8[%c0_25, %c0_26] : memref<8x128xf32, #tpu.memory_space<vmem>>, vector<8x128xf32>
    tpu.vector_store %arg8[%c0_25, %c0_26], %30 {strides = array<i32>} : memref<8x128xf32, #tpu.memory_space<vmem>>, vector<8x128xf32>,
    return
  }
  func.func @transform_0(%arg0: i32) -> (i32, i32) {
    %c0_i32 = arith.constant 0 : i32
    %c0_i32_0 = arith.constant 0 : i32
    return %arg0, %c0_i32 : i32, i32
  }
  func.func @transform_1(%arg0: i32) -> (i32, i32) {
    %c0_i32 = arith.constant 0 : i32
    %c0_i32_0 = arith.constant 0 : i32
    %c0_i32_1 = arith.constant 0 : i32
    return %c0_i32, %c0_i32_0 : i32, i32
  }
  func.func @transform_2(%arg0: i32) -> (i32, i32) {
    %c0_i32 = arith.constant 0 : i32
    %c0_i32_0 = arith.constant 0 : i32
    %c0_i32_1 = arith.constant 0 : i32
    return %c0_i32, %c0_i32_0 : i32, i32
  }
  func.func @transform_3(%arg0: i32) -> (i32, i32, i32) {
    %c0_i32 = arith.constant 0 : i32
    %c0_i32_0 = arith.constant 0 : i32
    %c0_i32_1 = arith.constant 0 : i32
    %c0_i32_2 = arith.constant 0 : i32
    return %c0_i32, %c0_i32_0, %c0_i32_1 : i32, i32, i32
  }
  func.func @transform_4(%arg0: i32) -> (i32, i32, i32) {
    %c0_i32 = arith.constant 0 : i32
    %c0_i32_0 = arith.constant 0 : i32
    %c0_i32_1 = arith.constant 0 : i32
    %c0_i32_2 = arith.constant 0 : i32
    return %c0_i32, %c0_i32_0, %c0_i32_1 : i32, i32, i32
  }
  func.func @transform_5(%arg0: i32) -> (i32, i32) {
    %c0_i32 = arith.constant 0 : i32
    %c0_i32_0 = arith.constant 0 : i32
    %c0_i32_1 = arith.constant 0 : i32
    return %c0_i32, %c0_i32_0 : i32, i32
  }
  func.func @transform_6(%arg0: i32) -> (i32, i32) {
    %c0_i32 = arith.constant 0 : i32
    %c0_i32_0 = arith.constant 0 : i32
    %c0_i32_1 = arith.constant 0 : i32
    return %c0_i32, %c0_i32_0 : i32, i32
  }
  func.func @transform_7(%arg0: i32) -> (i32, i32) {
    %c0_i32 = arith.constant 0 : i32
    %c0_i32_0 = arith.constant 0 : i32
    return %arg0, %c0_i32 : i32, i32
  }
}

</mosaic_0001>

<bundles_post_ra>
// kernel: res_mlp_forward.1
= control target key start
LH: loop header
LB: loop body
LE: loop exit
PB: predicated region body
PF: predicated region fallthrough
CT: control target
= control target key end

     0   :  { %12 = vsyncpa [#allocation3], 0  ;;  %s1044_s0 = inlined_call_operand.vmem [shape: f32[8,128], index: 0, kind: input, shape index: {}]   ;;  %s1045_s1 = inlined_call_operand.hbm [shape: f32[128,128], index: 1, kind: input, shape index: {}]   ;;  %s1046_s2 = inlined_call_operand.vmem [shape: f32[1,128], index: 2, kind: input, shape index: {}]   ;;  %s1047_s3 = inlined_call_operand.hbm [shape: f32[2,128,128], index: 3, kind: input, shape index: {}]   ;;  %s1048_s4 = inlined_call_operand.vmem [shape: f32[2,1,128], index: 4, kind: input, shape index: {}]   ;;  %s1049_s5 = inlined_call_operand.hbm [shape: f32[128,128], index: 5, kind: input, shape index: {}]   ;;  %s1050_s6 = inlined_call_operand.vmem [shape: f32[1,128], index: 6, kind: input, shape index: {}]   ;;  %s1051_s7 = inlined_call_operand.hbm [shape: f32[8,128], index: 7, kind: output, shape index: {}]  }
   0x1   :  { %13 = vsyncpa [#allocation6], 0 }
   0x2   :  { %14 = vsyncpa [#allocation4], 0  ;;  %s876_s24 = smov [#allocation5]   ;;  %s877_s26 = smov [#allocation2]  }
   0x3   :  { %s36_s25 = sshll.u32 %s876_s24, 4  ;;  %s22_s27 = sshll.u32 %s877_s26, 4  ;;  %s37_s25 = int_to_ptr.vmem [resolvable:$true] %s36_s25  ;;  %s925_s27 = int_to_ptr.vmem [resolvable:$true] %s22_s27 }
   0x4   :  { %s782_s30 = scalar_lea.hbm %s1047_s3, 4096 }
   0x5   :  { %p783_p0 = scmp.ne.s32.totalorder %s1047_s3, %s782_s30  ;;  %p786_p1 = scmp.lt.u32.totalorder %s782_s30, %s1047_s3 }
   0x7   :  { %p788_p2 = pnand %p786_p1, %p783_p0 }
   0x9   :  { %791 = shalt.err (!%p788_p2)
}
   0xa   :  { %s792_s12 = scalar_lea.vmem %s37_s25, 4096  ;;  %p797_p4 = scmp.lt.s32.totalorder %s37_s25, %s37_s25 }
   0xb   :  { %p793_p3 = scmp.ne.s32.totalorder %s37_s25, %s792_s12  ;;  %p798_p5 = scmp.lt.s32.totalorder %s792_s12, %s792_s12 }
   0xd   :  { %p799_p6 = por %p798_p5, %p797_p4 }
   0xf   :  { %p800_p7 = pnand %p799_p6, %p793_p3 }
  0x11   :  { %803 = shalt.err (!%p800_p7)
}
  0x12   :  { %s878_s13 = smov 128   ;;  %s879_s14 = smov 8  }
  0x13   :  { %42 = dma.hbm_to_vmem [thread:$0]  %s1047_s3, 4096, %s37_s25, [#allocation6], %s878_s13, %s878_s13, %s879_s14  }
  0x14   :  { %s804_s19 = scalar_lea.hbm %s1045_s1, 2048 }
  0x15   :  { %p805_p8 = scmp.ne.s32.totalorder %s1045_s1, %s804_s19  ;;  %p808_p9 = scmp.lt.u32.totalorder %s804_s19, %s1045_s1 }
  0x17   :  { %p810_p10 = pnand %p808_p9, %p805_p8 }
  0x19   :  { %813 = shalt.err (!%p810_p10)
}
  0x1a   :  { %s814_s24 = scalar_lea.vmem %s925_s27, 2048  ;;  %p819_p12 = scmp.lt.s32.totalorder %s925_s27, %s925_s27 }
  0x1b   :  { %p815_p11 = scmp.ne.s32.totalorder %s925_s27, %s814_s24  ;;  %p820_p13 = scmp.lt.s32.totalorder %s814_s24, %s814_s24 }
  0x1d   :  { %p821_p0 = por %p820_p13, %p819_p12 }
  0x1f   :  { %p822_p1 = pnand %p821_p0, %p815_p11 }
  0x21   :  { %825 = shalt.err (!%p822_p1)
}
  0x22   :  { %28 = dma.hbm_to_vmem [thread:$0]  %s1045_s1, 2048, %s925_s27, [#allocation3], %s878_s13, %s878_s13, %s879_s14  }
  0x23   :  { %s880_s26 = smov [#allocation7]   ;;  %s826_s8 = scalar_lea.hbm %s1049_s5, 2048 }
  0x24   :  { %s50_s28 = sshll.u32 %s880_s26, 4  ;;  %p827_p2 = scmp.ne.s32.totalorder %s1049_s5, %s826_s8  ;;  %s51_s28 = int_to_ptr.vmem [resolvable:$true] %s50_s28 }
  0x25   :  { %p830_p3 = scmp.lt.u32.totalorder %s826_s8, %s1049_s5 }
  0x27   :  { %p832_p4 = pnand %p830_p3, %p827_p2 }
  0x29   :  { %835 = shalt.err (!%p832_p4)
}
  0x2a   :  { %s836_s15 = scalar_lea.vmem %s51_s28, 2048  ;;  %p841_p6 = scmp.lt.s32.totalorder %s51_s28, %s51_s28 }
  0x2b   :  { %p837_p5 = scmp.ne.s32.totalorder %s51_s28, %s836_s15  ;;  %p842_p7 = scmp.lt.s32.totalorder %s836_s15, %s836_s15 }
  0x2d   :  { %p843_p8 = por %p842_p7, %p841_p6 }
  0x2f   :  { %p844_p9 = pnand %p843_p8, %p837_p5 }
  0x31   :  { %847 = shalt.err (!%p844_p9)
}
  0x32   :  { %56 = dma.hbm_to_vmem [thread:$0]  %s1049_s5, 2048, %s51_s28, [#allocation6], %s878_s13, %s878_s13, %s879_s14  }
  0x33   :  { %870 = dma.done.wait [#allocation3], 2048  }
  0x34   :  { %871 = vsyncadd [#allocation3], 4294965248 }
  0x35   :  { %872 = dma.done.wait [#allocation6], 6144  }
  0x36   :  { %873 = vsyncadd [#allocation6], 4294961152  ;;  %v881_v0 = vmov 0.0|0.0   ;;  %vm882_vm0 = vmmov 0   ;;  %v883_v1 = vmov 0.0   ;;  %v69_v2 = vld [vmem:[#allocation2] sm:$0xff] }
  0x37   :  { %677 = vmatprep.subr.bf16.mxu0 %v881_v0  ;;  %569 = vmatprep.mubr.msk.f32.mxu0 %vm882_vm0, %v883_v1  ;;  %v70_v3 = vld [vmem:[#allocation2 + $0x8] sm:$0xff]  ;;  %v71_v4 = vld [vmem:[#allocation2 + $0x10] sm:$0xff]  ;;  %v72_v6 = vld [vmem:[#allocation2 + $0x18] sm:$0xff]  ;;  %s884_s21 = smov [#allocation8]  }
  0x38   :  { %701 = vmatprep.subr.bf16.mxu1 %v881_v0  ;;  %604 = vmatprep.mubr.msk.f32.mxu1 %vm882_vm0, %v883_v1  ;;  %v678_v5 = vpack.c.bf16 %v70_v3, %v69_v2  ;;  %v681_v7 = vpack.c.bf16 %v72_v6, %v71_v4  ;;  %v73_v8 = vld [vmem:[#allocation2 + $0x20] sm:$0xff]  ;;  %v74_v9 = vld [vmem:[#allocation2 + $0x28] sm:$0xff]  ;;  %v164_v12 = vld [vmem:[#allocation5 + $0x10] sm:$0xff]  ;;  %s454_s22 = sshll.u32 %s884_s21, 4  ;;  %s455_s22 = int_to_ptr.vmem [resolvable:$true] %s454_s22 }
  0x39   :  { %v162_v10 = vld [vmem:[#allocation5] sm:$0xff]  ;;  %v163_v11 = vld [vmem:[#allocation5 + $0x8] sm:$0xff]  ;;  %v165_v13 = vld [vmem:[#allocation5 + $0x18] sm:$0xff]  ;;  %v684_v14 = vpack.c.bf16 %v74_v9, %v73_v8  ;;  %s848_s23 = scalar_lea.vmem %s455_s22, 128  ;;  %p853_p11 = scmp.lt.s32.totalorder %s455_s22, %s455_s22 }
  0x3a   :  { %679 = vmatpush3.bf16.msra.mxu0 %v678_v5  ;;  %v702_v15 = vpack.c.bf16 %v163_v11, %v162_v10  ;;  %v75_v16 = vld [vmem:[#allocation2 + $0x30] sm:$0xff]  ;;  %v76_v17 = vld [vmem:[#allocation2 + $0x38] sm:$0xff]  ;;  %v705_v18 = vpack.c.bf16 %v165_v13, %v164_v12  ;;  %v166_v19 = vld [vmem:[#allocation5 + $0x20] sm:$0xff]  ;;  %p849_p10 = scmp.ne.s32.totalorder %s455_s22, %s848_s23  ;;  %p854_p12 = scmp.lt.s32.totalorder %s848_s23, %s848_s23 }
  0x3b   :  { %680 = vmatprep.subr.bf16.mxu0 %v881_v0  ;;  %v167_v20 = vld [vmem:[#allocation5 + $0x28] sm:$0xff]  ;;  %v687_v21 = vpack.c.bf16 %v76_v17, %v75_v16  ;;  %v77_v22 = vld [vmem:[#allocation2 + $0x40] sm:$0xff]  ;;  %v168_v25 = vld [vmem:[#allocation5 + $0x30] sm:$0xff] }
  0x3c   :  { %703 = vmatpush3.bf16.msra.mxu1 %v702_v15  ;;  %v78_v23 = vld [vmem:[#allocation2 + $0x48] sm:$0xff]  ;;  %v708_v24 = vpack.c.bf16 %v167_v20, %v166_v19  ;;  %v169_v26 = vld [vmem:[#allocation5 + $0x38] sm:$0xff]  ;;  %v79_v28 = vld [vmem:[#allocation2 + $0x50] sm:$0xff]  ;;  %p855_p13 = por %p854_p12, %p853_p11 }
  0x3d   :  { %704 = vmatprep.subr.bf16.mxu1 %v881_v0  ;;  %v690_v27 = vpack.c.bf16 %v78_v23, %v77_v22  ;;  %v80_v29 = vld [vmem:[#allocation2 + $0x58] sm:$0xff]  ;;  %v711_v30 = vpack.c.bf16 %v169_v26, %v168_v25  ;;  %v170_v31 = vld [vmem:[#allocation5 + $0x40] sm:$0xff]  ;;  %v171_v32 = vld [vmem:[#allocation5 + $0x48] sm:$0xff] }
  0x3e   :  { %682 = vmatpush3.bf16.msra.mxu0 %v681_v7  ;;  %v693_v33 = vpack.c.bf16 %v80_v29, %v79_v28  ;;  %v81_v34 = vld [vmem:[#allocation2 + $0x60] sm:$0xff]  ;;  %v82_v35 = vld [vmem:[#allocation2 + $0x68] sm:$0xff]  ;;  %v714_v36 = vpack.c.bf16 %v171_v32, %v170_v31  ;;  %v172_v37 = vld [vmem:[#allocation5 + $0x50] sm:$0xff]  ;;  %p856_p0 = pnand %p855_p13, %p849_p10 }
  0x3f   :  { %683 = vmatprep.subr.bf16.mxu0 %v881_v0  ;;  %v173_v38 = vld [vmem:[#allocation5 + $0x58] sm:$0xff]  ;;  %v696_v39 = vpack.c.bf16 %v82_v35, %v81_v34  ;;  %v83_v40 = vld [vmem:[#allocation2 + $0x70] sm:$0xff]  ;;  %v174_v43 = vld [vmem:[#allocation5 + $0x60] sm:$0xff] }
  0x40   :  { %706 = vmatpush3.bf16.msra.mxu1 %v705_v18  ;;  %v84_v41 = vld [vmem:[#allocation2 + $0x78] sm:$0xff]  ;;  %v717_v42 = vpack.c.bf16 %v173_v38, %v172_v37  ;;  %v175_v44 = vld [vmem:[#allocation5 + $0x68] sm:$0xff]  ;;  %v68_v47 = vld [vmem:[%s1044_s0] sm:$0xff] }
  0x41   :  { %707 = vmatprep.subr.bf16.mxu1 %v881_v0  ;;  %v699_v45 = vpack.c.bf16 %v84_v41, %v83_v40  ;;  %v720_v46 = vpack.c.bf16 %v175_v44, %v174_v43  ;;  %v176_v48 = vld [vmem:[#allocation5 + $0x70] sm:$0xff]  ;;  %v177_v49 = vld [vmem:[#allocation5 + $0x78] sm:$0xff]  ;;  %v258_v51 = vld [vmem:[#allocation5 + $0x80] sm:$0xff] }
  0x42   :  { %685 = vmatpush3.bf16.msra.mxu0 %v684_v14  ;;  %v723_v50 = vpack.c.bf16 %v177_v49, %v176_v48  ;;  %v259_v52 = vld [vmem:[#allocation5 + $0x88] sm:$0xff]  ;;  %v260_v53 = vld [vmem:[#allocation5 + $0x90] sm:$0xff]  ;;  %v261_v55 = vld [vmem:[#allocation5 + $0x98] sm:$0xff] }
  0x43   :  { %686 = vmatprep.subr.bf16.mxu0 %v881_v0  ;;  %v726_v54 = vpack.c.bf16 %v259_v52, %v258_v51  ;;  %v729_v56 = vpack.c.bf16 %v261_v55, %v260_v53  ;;  %v262_v57 = vld [vmem:[#allocation5 + $0xa0] sm:$0xff]  ;;  %v263_v58 = vld [vmem:[#allocation5 + $0xa8] sm:$0xff]  ;;  %v264_v60 = vld [vmem:[#allocation5 + $0xb0] sm:$0xff] }
  0x44   :  { %709 = vmatpush3.bf16.msra.mxu1 %v708_v24  ;;  %v732_v59 = vpack.c.bf16 %v263_v58, %v262_v57  ;;  %v265_v61 = vld [vmem:[#allocation5 + $0xb8] sm:$0xff]  ;;  %v266_v63 = vld [vmem:[#allocation5 + $0xc0] sm:$0xff]  ;;  %v267_v2 = vld [vmem:[#allocation5 + $0xc8] sm:$0xff] }
  0x45   :  { %710 = vmatprep.subr.bf16.mxu1 %v881_v0  ;;  %v735_v62 = vpack.c.bf16 %v265_v61, %v264_v60  ;;  %v738_v3 = vpack.c.bf16 %v267_v2, %v266_v63  ;;  %v268_v4 = vld [vmem:[#allocation5 + $0xd0] sm:$0xff]  ;;  %v269_v5 = vld [vmem:[#allocation5 + $0xd8] sm:$0xff]  ;;  %v464_v7 = vld [vmem:[%s1046_s2] ss:$0 sm:$0xff] }
  0x46   :  { %688 = vmatpush3.bf16.msra.mxu0 %v687_v21  ;;  %v741_v6 = vpack.c.bf16 %v269_v5, %v268_v4  ;;  %v270_v11 = vld [vmem:[#allocation5 + $0xe0] sm:$0xff]  ;;  %v271_v12 = vld [vmem:[#allocation5 + $0xe8] sm:$0xff]  ;;  %v272_v14 = vld [vmem:[#allocation5 + $0xf0] sm:$0xff] }
  0x47   :  { %689 = vmatprep.subr.bf16.mxu0 %v881_v0  ;;  %v744_v13 = vpack.c.bf16 %v271_v12, %v270_v11  ;;  %v273_v15 = vld [vmem:[#allocation5 + $0xf8] sm:$0xff]  ;;  %v354_v17 = vld [vmem:[#allocation7] sm:$0xff]  ;;  %v355_v18 = vld [vmem:[#allocation7 + $0x8] sm:$0xff] }
  0x48   :  { %712 = vmatpush3.bf16.msra.mxu1 %v711_v30  ;;  %v747_v16 = vpack.c.bf16 %v273_v15, %v272_v14  ;;  %v356_v19 = vld [vmem:[#allocation7 + $0x10] sm:$0xff]  ;;  %v750_v20 = vpack.c.bf16 %v355_v18, %v354_v17  ;;  %v357_v21 = vld [vmem:[#allocation7 + $0x18] sm:$0xff]  ;;  %v359_v23 = vld [vmem:[#allocation7 + $0x28] sm:$0xff] }
  0x49   :  { %713 = vmatprep.subr.bf16.mxu1 %v881_v0  ;;  %v753_v22 = vpack.c.bf16 %v357_v21, %v356_v19  ;;  %v360_v25 = vld [vmem:[#allocation7 + $0x30] sm:$0xff]  ;;  %v361_v26 = vld [vmem:[#allocation7 + $0x38] sm:$0xff]  ;;  %v362_v28 = vld [vmem:[#allocation7 + $0x40] sm:$0xff] }
  0x4a   :  { %691 = vmatpush3.bf16.msra.mxu0 %v690_v27  ;;  %v759_v27 = vpack.c.bf16 %v361_v26, %v360_v25  ;;  %v363_v29 = vld [vmem:[#allocation7 + $0x48] sm:$0xff]  ;;  %v364_v31 = vld [vmem:[#allocation7 + $0x50] sm:$0xff]  ;;  %v365_v32 = vld [vmem:[#allocation7 + $0x58] sm:$0xff] }
  0x4b   :  { %692 = vmatprep.subr.bf16.mxu0 %v881_v0  ;;  %v762_v30 = vpack.c.bf16 %v363_v29, %v362_v28  ;;  %v465_v34 = vld [vmem:[%s1048_s4] ss:$0 sm:$0xff]  ;;  %v367_v41 = vld [vmem:[#allocation7 + $0x68] sm:$0xff]  ;;  %v368_v43 = vld [vmem:[#allocation7 + $0x70] sm:$0xff] }
  0x4c   :  { %715 = vmatpush3.bf16.msra.mxu1 %v714_v36  ;;  %v366_v40 = vld [vmem:[#allocation7 + $0x60] sm:$0xff]  ;;  %v369_v44 = vld [vmem:[#allocation7 + $0x78] sm:$0xff] }
  0x4d   :  { %716 = vmatprep.subr.bf16.mxu1 %v881_v0  ;;  %v468_v52 = vld [vmem:[%s1050_s6] ss:$0 sm:$0xff] }
  0x4e   :  { %694 = vmatpush3.bf16.msra.mxu0 %v693_v33  ;;  %v765_v33 = vpack.c.bf16 %v365_v32, %v364_v31 }
  0x4f   :  { %695 = vmatprep.subr.bf16.mxu0 %v881_v0 }
  0x50   :  { %718 = vmatpush3.bf16.msra.mxu1 %v717_v42  ;;  %v768_v42 = vpack.c.bf16 %v367_v41, %v366_v40 }
  0x51   :  { %719 = vmatprep.subr.bf16.mxu1 %v881_v0 }
  0x52   :  { %697 = vmatpush3.bf16.msra.mxu0 %v696_v39 }
  0x53   :  { %698 = vmatprep.subr.bf16.mxu0 %v881_v0 }
  0x54   :  { %721 = vmatpush3.bf16.msra.mxu1 %v720_v46  ;;  %v467_v46 = vld [vmem:[%s1048_s4 + $0x1] ss:$0 sm:$0xff] }
  0x55   :  { %722 = vmatprep.subr.bf16.mxu1 %v881_v0 }
  0x56   :  { %700 = vmatpush3.bf16.msra.mxu0 %v699_v45  ;;  %v771_v45 = vpack.c.bf16 %v369_v44, %v368_v43 }
  0x57   :  { %725 = vmatprep.subr.bf16.mxu0 %v881_v0 }
  0x58   :  { %724 = vmatpush3.bf16.msra.mxu1 %v723_v50 }
  0x59   :  { %570 = vmatmul.mubr.f32.vlgmr.msra.gmra.mrb[0].mxu0 %v68_v47  ;;  %749 = vmatprep.subr.bf16.mxu1 %v881_v0 }
  0x5a   :  { %639 = vmatprep.mubr.msk.f32.mxu0 %vm882_vm0, %v883_v1  ;;  %727 = vmatpush3.bf16.msra.mxu0 %v726_v54 }
  0x5b   :  { %728 = vmatprep.subr.bf16.mxu0 %v881_v0 }
  0x5e   :  { %730 = vmatpush3.bf16.msra.mxu0 %v729_v56 }
  0x5f   :  { %731 = vmatprep.subr.bf16.mxu0 %v881_v0 }
  0x62   :  { %733 = vmatpush3.bf16.msra.mxu0 %v732_v59 }
  0x63   :  { %734 = vmatprep.subr.bf16.mxu0 %v881_v0 }
  0x66   :  { %736 = vmatpush3.bf16.msra.mxu0 %v735_v62 }
  0x67   :  { %737 = vmatprep.subr.bf16.mxu0 %v881_v0 }
  0x6a   :  { %739 = vmatpush3.bf16.msra.mxu0 %v738_v3 }
  0x6b   :  { %740 = vmatprep.subr.bf16.mxu0 %v881_v0 }
  0x6e   :  { %742 = vmatpush3.bf16.msra.mxu0 %v741_v6 }
  0x6f   :  { %743 = vmatprep.subr.bf16.mxu0 %v881_v0 }
  0x72   :  { %745 = vmatpush3.bf16.msra.mxu0 %v744_v13 }
  0x73   :  { %746 = vmatprep.subr.bf16.mxu0 %v881_v0 }
  0x76   :  { %748 = vmatpush3.bf16.msra.mxu0 %v747_v16 }
 0x12c   :  { %v158_v8 = vpop.f32.mrb[0].mxu0 }
 0x12d   :  { %v159_v9 = vadd.f32 %v464_v7, %v158_v8  ;;  %v571_v10 = vpop.f32.mrb[1].mxu0 }
 0x12f   :  { %605 = vmatmul.mubr.f32.vlgmr.msra.gmra.mrb[0].mxu1 %v159_v9 }
 0x130   :  { %674 = vmatprep.mubr.msk.f32.mxu1 %vm882_vm0, %v883_v1  ;;  %751 = vmatpush3.bf16.msra.mxu1 %v750_v20  ;;  %v358_v1 = vld [vmem:[#allocation7 + $0x20] sm:$0xff] }
 0x131   :  { %752 = vmatprep.subr.bf16.mxu1 %v881_v0  ;;  %v756_v24 = vpack.c.bf16 %v359_v23, %v358_v1 }
 0x134   :  { %754 = vmatpush3.bf16.msra.mxu1 %v753_v22 }
 0x135   :  { %755 = vmatprep.subr.bf16.mxu1 %v881_v0 }
 0x138   :  { %757 = vmatpush3.bf16.msra.mxu1 %v756_v24 }
 0x139   :  { %758 = vmatprep.subr.bf16.mxu1 %v881_v0 }
 0x13c   :  { %760 = vmatpush3.bf16.msra.mxu1 %v759_v27 }
 0x13d   :  { %761 = vmatprep.subr.bf16.mxu1 %v881_v0 }
 0x140   :  { %763 = vmatpush3.bf16.msra.mxu1 %v762_v30 }
 0x141   :  { %764 = vmatprep.subr.bf16.mxu1 %v881_v0 }
 0x144   :  { %766 = vmatpush3.bf16.msra.mxu1 %v765_v33 }
 0x145   :  { %767 = vmatprep.subr.bf16.mxu1 %v881_v0 }
 0x148   :  { %769 = vmatpush3.bf16.msra.mxu1 %v768_v42 }
 0x149   :  { %770 = vmatprep.subr.bf16.mxu1 %v881_v0 }
 0x14c   :  { %772 = vmatpush3.bf16.msra.mxu1 %v771_v45 }
 0x202   :  { %v251_v35 = vpop.f32.mrb[0].mxu1 }
 0x203   :  { %v252_v36 = vadd.f32 %v465_v34, %v251_v35  ;;  %v606_v37 = vpop.f32.mrb[1].mxu1 }
 0x205   :  { %v255_v38 = vmax.f32 %v252_v36, 0.0 }
 0x207   :  { %v256_v39 = vadd.f32 %v255_v38, %v159_v9 }
 0x209   :  { %640 = vmatmul.mubr.f32.vlgmr.msra.gmra.mrb[2].mxu0 %v256_v39 }
 0x2dc   :  { %v348_v47 = vpop.f32.mrb[2].mxu0 }
 0x2dd   :  { %v349_v48 = vadd.f32 %v467_v46, %v348_v47  ;;  %v641_v49 = vpop.f32.mrb[3].mxu0 }
 0x2df   :  { %v352_v50 = vmax.f32 %v349_v48, 0.0 }
 0x2e1   :  { %v353_v51 = vadd.f32 %v352_v50, %v256_v39 }
 0x2e3   :  { %675 = vmatmul.mubr.f32.vlgmr.msra.gmra.mrb[2].mxu1 %v353_v51 }
 0x3b6   :  { %v443_v0 = vpop.f32.mrb[2].mxu1 }
 0x3b7   :  { %v444_v53 = vadd.f32 %v468_v52, %v443_v0  ;;  %v676_v54 = vpop.f32.mrb[3].mxu1 }
 0x3b9   :  { %447 = vst [vmem:[#allocation8] sm:$0xff] %v444_v53 }
 0x3ba   :  { %859 = shalt.err (!%p856_p0)
}
 0x3bb   :  { %s860_s3 = scalar_lea.hbm %s1051_s7, 128 }
 0x3bc   :  { %p861_p1 = scmp.ne.s32.totalorder %s1051_s7, %s860_s3  ;;  %p864_p2 = scmp.lt.u32.totalorder %s860_s3, %s1051_s7 }
 0x3be   :  { %p866_p3 = pnand %p864_p2, %p861_p1 }
 0x3c0   :  { %869 = shalt.err (!%p866_p3)
}
 0x3c1   :  { %457 = dma.vmem_to_hbm [thread:$0]  %s455_s22, 128, %s1051_s7, [#allocation4]  }
 0x3c2   :  { %874 = dma.done.wait [#allocation4], 128  }
 0x3c3   :  { %875 = vsyncadd [#allocation4], 4294967168 }
 0x3c4   :  { %461 = vsyncpa [#allocation3], 1 }
 0x3c5   :  { %462 = vsyncpa [#allocation6], 1 }
 0x3c6   :  { %463 = vsyncpa [#allocation4], 1 }

</bundles_post_ra>
